<compile_context>
chip_gen: v6e
topology: v6e:2x2x1
jax: 0.10.0
libtpu: 0.0.40
codegen_flags: <defaults>
</compile_context>

<pallas_src>
import jax
import jax.numpy as jnp
from jax.experimental import pallas as pl
from jax.experimental.pallas import tpu as pltpu


# TODO(synk): `self.baseNet` is undefined in BaseNet.__init__ (abstract base);
# it is treated as identity here.  Subclasses would plug their backbone in
# front of this softmax kernel.


_TARGET_BLOCK_BYTES = 1 * 1024 * 1024   # per-block target (v7x-safe, ~roofline)
_MIN_GRID_STEPS = 4                     # aim for >= 4 steps (2 TCs + pipelining)


def _softmax_channel_kernel(x_ref, o_ref):
    # x_ref / o_ref: (1, C, THW) in VMEM.  Softmax over axis=1 (channels),
    # numerically stable (subtract max), computed in f32.  Any garbage in
    # out-of-bounds edge lanes stays in those lanes (reduction is per-column
    # over C only) and the corresponding stores are masked by Pallas.
    x = x_ref[...].astype(jnp.float32)
    m = jnp.max(x, axis=1, keepdims=True)
    e = jnp.exp(x - m)
    s = jnp.sum(e, axis=1, keepdims=True)
    o_ref[...] = (e / s).astype(o_ref.dtype)


def _tile_plan(N, C, hw, itemsize):
    """Pick the spatial tile THW and grid. Returns (thw, grid, block_bytes)."""
    if hw < 256:
        # Block's last dim equals the full array dim -> exempt from the
        # 128-divisibility rule; no padding, edge stores handled by Pallas.
        return hw, (N,), C * hw * itemsize

    # Lane budget from the per-block byte target (block = (1, C, thw)).
    lanes = (_TARGET_BLOCK_BYTES // (C * itemsize)) // 128 * 128
    lanes = max(128, lanes)

    # Ensure enough total grid steps to shard across TCs and pipeline.
    want_spatial = max(1, -(-_MIN_GRID_STEPS // N))          # ceil(4 / N)
    max_thw_for_steps = max(128, (hw // want_spatial) // 128 * 128)

    thw = max(128, min(lanes, max_thw_for_steps, (hw // 128) * 128))
    n_sp = -(-hw // thw)                                      # cdiv; last tile partial
    return thw, (N, n_sp), C * thw * itemsize


def basenet_forward(x):
    """x: (N, C, H, W) -> softmax over channel dim (PyTorch dim=1 for 4-D)."""
    N, C, H, W = x.shape
    hw = H * W
    itemsize = jnp.dtype(x.dtype).itemsize

    thw, grid, block_bytes = _tile_plan(N, C, hw, itemsize)

    if len(grid) == 1:
        block = (1, C, hw)
        in_spec = pl.BlockSpec(block, lambda n: (n, 0, 0))
        out_spec = pl.BlockSpec(block, lambda n: (n, 0, 0))
        dims = ("parallel",)
    else:
        block = (1, C, thw)
        in_spec = pl.BlockSpec(block, lambda n, s: (n, 0, s))
        out_spec = pl.BlockSpec(block, lambda n, s: (n, 0, s))
        dims = ("parallel", "parallel")

    # ~4 double-buffered I/O blocks + f32 temporaries ≈ 10x block; cap at
    # 48 MiB (fits v7x's 64 MiB physical VMEM, trivially fits v5e/v6e).
    vmem_limit = int(min(48 * 1024 * 1024,
                         max(16 * 1024 * 1024, 10 * block_bytes)))

    x3 = x.reshape(N, C, hw)

    out3 = pl.pallas_call(
        _softmax_channel_kernel,
        out_shape=jax.ShapeDtypeStruct((N, C, hw), x.dtype),
        grid_spec=pltpu.PrefetchScalarGridSpec(
            num_scalar_prefetch=0,
            grid=grid,
            in_specs=[in_spec],
            out_specs=out_spec,
        ),
        compiler_params=pltpu.CompilerParams(
            dimension_semantics=dims,
            vmem_limit_bytes=vmem_limit,
        ),
    )(x3)

    return out3.reshape(N, C, H, W)


def _check(x, atol=1e-5):
    out = jax.block_until_ready(basenet_forward(x))
    ref = jax.nn.softmax(x, axis=1)
    assert out.shape == x.shape
    assert jnp.allclose(out, ref, atol=atol, rtol=atol), "mismatch vs reference"
    assert jnp.allclose(jnp.sum(out, axis=1), 1.0, atol=1e-5), "rows don't sum to 1"


if __name__ == "__main__":
    key = jax.random.PRNGKey(0)
    k0, k1, k2, k3 = jax.random.split(key, 4)

    # Small NCHW input consistent with a conv-style base network
    # (hw = 256 -> tiled path, grid (2, 2), lane-dense 128-wide tiles).
    x = jax.random.normal(k0, (2, 4, 16, 16), dtype=jnp.float32)
    _check(x)

    # Spatial size < 256 and not a multiple of 128 (14*14 = 196): block last
    # dim equals the full array dim, no host padding/slicing.
    x_small = jax.random.normal(k1, (2, 4, 14, 14), dtype=jnp.float32)
    _check(x_small)

    # Spatial size >= 256 and not a multiple of 128 (20*20 = 400): exercises
    # the ragged last tile masked inside the kernel (grid (1, 4)).
    x_ragged = jax.random.normal(k2, (1, 8, 20, 20), dtype=jnp.float32)
    _check(x_ragged)

    # Larger shape exercising the multi-tile (N, HW-tiles) grid path.
    x_big = jax.random.normal(k3, (2, 16, 128, 128), dtype=jnp.float32)
    _check(x_big)

    print("KERNEL_OK")
</pallas_src>

<mosaic_0001>
module attributes {stable_mosaic.version = 11 : i64} {
  func.func @_softmax_channel_kernel(%arg0: i32, %arg1: i32, %arg2: memref<1x4x128xf32, #tpu.memory_space<vmem>>, %arg3: memref<1x4x128xf32, #tpu.memory_space<vmem>>) attributes {dimension_semantics = [#tpu.dimension_semantics<parallel>, #tpu.dimension_semantics<parallel>], iteration_bounds = array<i64: 2, 2>, scalar_prefetch = 0 : i64, scratch_operands = 0 : i64, tpu.core_type = #tpu.core_type<tc>, window_params = [{transform_indices = @transform_0, window_bounds = array<i64: 1, 4, 128>}, {transform_indices = @transform_1, window_bounds = array<i64: 1, 4, 128>}]} {
    %c0 = arith.constant 0 : index
    %c0_0 = arith.constant 0 : index
    %c0_1 = arith.constant 0 : index
    %0 = vector.load %arg2[%c0, %c0_0, %c0_1] : memref<1x4x128xf32, #tpu.memory_space<vmem>>, vector<1x4x128xf32>
    %cst = arith.constant dense<0xFF800000> : vector<1x128xf32>
    %1 = vector.multi_reduction <maximumf>, %0, %cst [1] : vector<1x4x128xf32> to vector<1x128xf32>
    %2 = vector.shape_cast %1 : vector<1x128xf32> to vector<1x1x128xf32>
    %3 = vector.broadcast %2 : vector<1x1x128xf32> to vector<1x4x128xf32>
    %4 = arith.subf %0, %3 : vector<1x4x128xf32>
    %5 = math.exp %4 : vector<1x4x128xf32>
    %cst_2 = arith.constant dense<0.000000e+00> : vector<1x128xf32>
    %6 = vector.multi_reduction <add>, %5, %cst_2 [1] : vector<1x4x128xf32> to vector<1x128xf32>
    %7 = vector.shape_cast %6 : vector<1x128xf32> to vector<1x1x128xf32>
    %8 = vector.broadcast %7 : vector<1x1x128xf32> to vector<1x4x128xf32>
    %9 = arith.divf %5, %8 : vector<1x4x128xf32>
    %c0_3 = arith.constant 0 : index
    %c0_4 = arith.constant 0 : index
    %c0_5 = arith.constant 0 : index
    %10 = vector.load %arg3[%c0_3, %c0_4, %c0_5] : memref<1x4x128xf32, #tpu.memory_space<vmem>>, vector<1x4x128xf32>
    tpu.vector_store %arg3[%c0_3, %c0_4, %c0_5], %9 {strides = array<i32>} : memref<1x4x128xf32, #tpu.memory_space<vmem>>, vector<1x4x128xf32>,
    return
  }
  func.func @transform_0(%arg0: i32, %arg1: i32) -> (i32, i32, i32) {
    %c0_i32 = arith.constant 0 : i32
    %c0_i32_0 = arith.constant 0 : i32
    return %arg0, %c0_i32, %arg1 : i32, i32, i32
  }
  func.func @transform_1(%arg0: i32, %arg1: i32) -> (i32, i32, i32) {
    %c0_i32 = arith.constant 0 : i32
    %c0_i32_0 = arith.constant 0 : i32
    return %arg0, %c0_i32, %arg1 : i32, i32, i32
  }
}

</mosaic_0001>

<bundles_post_ra>
// kernel: tpu_custom_call.1
= control target key start
LH: loop header
LB: loop body
LE: loop exit
PB: predicated region body
PF: predicated region fallthrough
CT: control target
= control target key end

     0   :  { %6 = vsyncpa [#allocation3], 0  ;;  %s664_s0 = inlined_call_operand.hbm [shape: f32[2,4,256], index: 0, kind: input, shape index: {}]   ;;  %s665_s1 = inlined_call_operand.hbm [shape: f32[2,4,256], index: 1, kind: output, shape index: {}]  }
   0x1   :  { %8 = vsyncpa [#allocation3 + $0x1], 0 }
   0x2   :  { %9 = vsyncpa [#allocation4], 0 }
   0x3   :  { %11 = vsyncpa [#allocation4 + $0x1], 0  ;;  %s508_s6 = smov 0   ;;  %s510_s7 = smov 0  }
   0x4   :  { %s512_s8 = smov 0   ;;  %s514_s9 = smov 0  }
   0x5   :  { %s516_s10 = smov 0   ;;  %s518_s11 = smov 0  }
   0x6   :  { %s520_s12 = smov 0   ;;  %s522_s13 = smov 0  }
   0x7 LB: > { %s273_s14 = sadd.s32 4294967295, %s494_s13   ;;  %s274_s15 = sadd.s32 4294967294, %s494_s13   ;;  %s494_s13 = sphi %s522_s13, %s17_s13   ;;  %s490_s12 = sphi %s520_s12, %s678_s12   ;;  %s486_s11 = sphi %s518_s11, %s677_s11   ;;  %s482_s10 = sphi %s516_s10, %s676_s10   ;;  %s478_s9 = sphi %s514_s9, %s675_s9   ;;  %s474_s8 = sphi %s512_s8, %s674_s8   ;;  %s470_s7 = sphi %s510_s7, %s673_s7   ;;  %s466_s6 = sphi %s508_s6, %s672_s6  }
   0x8   : > { %s26_s16 = sadd.s32 1, %s486_s11  ;;  %s29_s17 = sadd.s32 1, %s490_s12 }
   0x9   : > { %p27_p0 = scmp.ge.s32.totalorder %s26_s16, 2  ;;  %s38_s18 = sadd.s32 1, %s474_s8 }
   0xa   : > { %p45_p1 = scmp.ne.s32.totalorder %s474_s8, %s470_s7  ;;  %p46_p2 = scmp.eq.s32.totalorder %s494_s13, 0 }
   0xb   : > { %s680_s16 = smov (%p27_p0, %s26_s16), 0  ;;  %s682_s17 = smov (!%p27_p0, %s29_s17), %s490_s12 }
   0xc   : > { %s34_s19 = ssub.s32 %s486_s11, %s680_s16  ;;  %p561_p3 = por %p46_p2, %p45_p1 }
   0xd   : > { %p31_p4 = scmp.ge.s32.totalorder %s682_s17, 2  ;;  %p51_p5 = scmp.ne.s32.totalorder %s470_s7, %s466_s6 }
   0xe   : > { %p52_p6 = scmp.eq.s32.totalorder %s273_s14, 0  ;;  %p77_p7 = scmp.eq.s32.totalorder %s273_s14, 3 }
   0xf   : > { %s684_s17 = smov (%p31_p4, %s682_s17), 0  ;;  %p83_p10 = scmp.eq.s32.totalorder %s274_s15, 3 }
  0x10   : > { %p569_p8 = por %p52_p6, %p51_p5  ;;  %p573_p9 = por %p77_p7, %p45_p1 }
  0x11   : > { %s33_s23 = ssub.s32 %s490_s12, %s684_s17  ;;  %p579_p12 = por %p83_p10, %p51_p5 }
  0x12   : > { %s35_s24 = sor.u32 %s34_s19, %s33_s23  ;;  %p300_p13 = scmp.lt.s32.totalorder %s494_s13, 4 }
  0x13   : > { %p36_p11 = scmp.eq.s32.totalorder %s35_s24, 0  ;;  %s103_s26 = sand.u32 1, %s474_s8  }
  0x14   : > { %s669_s25 = scalar_select %p579_p12, 1, 0 }
  0x15   : > { %s586_s27 = scalar_select %p36_p11, %s474_s8, %s38_s18  }
  0x16   : > { %s277_s28 = sshll.u32 %s103_s26, 2  ;;  %s278_s29 = sshll.u32 %s490_s12, 1 }
  0x17   : > { %s112_s30 = sadd.s32 %s486_s11, %s278_s29  ;;  %s107_s2 = scalar_lea.vmem [#allocation2], %s277_s28 }
  0x18   : > { %s116_s3 = sshll.u32 %s107_s2, 4  ;;  %s279_s4 = sshll.u32 %s112_s30, 6  ;;  %s117_s3 = int_to_ptr.vmem [resolvable:$true] %s116_s3 }
  0x19   : > { %s114_s15 = scalar_lea.hbm %s664_s0, %s279_s4  ;;  %p595_p0 = pnand %p300_p13, %p561_p3 }
  0x1a   : > { %p280_p1 = scmp.ge.s32.totalorder %s494_s13, 1  ;;  %p121_p2 = scmp.lt.s32.totalorder %s494_s13, 5 }
  0x1b   : > { %s104_s18 = scalar_lea.sflag [#allocation3], %s103_s26  ;;  %p372_p4 = pneg %p595_p0 }
  0x1c   : > { %s383_s23 = scalar_lea.vmem %s117_s3, 64  ;;  %s496_s24 = smov [#allocation2]  }
  0x1d   : > { %p384_p5 = scmp.ne.s32.totalorder %s117_s3, %s383_s23  ;;  %s388_s28 = sshll.u32 %s496_s24, 4  ;;  %s389_s28 = int_to_ptr.vmem [resolvable:$false] %s388_s28 }
  0x1e   : > { %s390_s29 = scalar_lea.vmem %s389_s28, 128  ;;  %p391_p10 = scmp.lt.s32.totalorder %s117_s3, %s389_s28 }
  0x1f   : > { %p386_p6 = pnand %p384_p5, %p372_p4  ;;  %p392_p11 = scmp.lt.s32.totalorder %s390_s29, %s383_s23 }
  0x21   : > { %p387_p7 = pneg %p386_p6  ;;  %p393_p3 = por %p392_p11, %p391_p10 }
  0x23   : > { %p394_p13 = pnand %p393_p3, %p387_p7 }
  0x25   : > { %397 = shalt.err (!%p394_p13)
}
  0x26   : > { %295 = dma.hbm_to_vmem [thread:$0]  (!%p595_p0), %s114_s15, 64, %s117_s3, %s104_s18  }
  0x27   : > { %p122_p12 = pnand %p280_p1, %p121_p2 }
  0x28   : > { %s610_s20 = sand.u32 (!%p122_p12), 1, %s470_s7  }
  0x29   : > { %125 = sbr.rel (%p122_p12) target bundleno = 121 (0x79), region = 24  ;;  %s281_s26 = sshll.u32 (!%p122_p12), %s610_s20, 2 }
  0x2a   : > { %s128_s30 = scalar_lea.sflag (!%p122_p12), [#allocation3], %s610_s20  ;;  %s131_s2 = scalar_lea.vmem (!%p122_p12), [#allocation2], %s281_s26 }
  0x2e   : > { %457 = dma.done.wait (%p569_p8), %s128_s30, 64  }
  0x2f   : > { %459 = vsyncadd (%p569_p8), %s128_s30, 4294967232  ;;  %vm151_vm0 = vcmask 1043456   ;;  %v150_v0 = vld [vmem:[%s131_s2] sm:$0xf]  ;;  %s284_s21 = sshll.u32 %s482_s10, 1  ;;  %s149_s4 = scalar_lea.vmem [#allocation5], %s281_s26 }
  0x30   : > { %v152_v1 = vsel %vm151_vm0, %v150_v0, -inf  ;;  %s184_s3 = sadd.s32 %s478_s9, %s284_s21  ;;  %s188_s5 = sshll.u32 %s149_s4, 4  ;;  %s189_s5 = int_to_ptr.vmem [resolvable:$true] %s188_s5 }
  0x31   : > { %v153_v2 = vrot.slane %v152_v1, 4  ;;  %s285_s14 = sshll.u32 %s184_s3, 6  ;;  %s173_s23 = scalar_lea.sflag [#allocation4], %s610_s20 }
  0x32   : > { %s186_s18 = scalar_lea.hbm %s665_s1, %s285_s14  ;;  %s398_s24 = scalar_lea.vmem %s189_s5, 64 }
  0x33   : > { %v154_v3 = vmax.f32 %v152_v1, %v153_v2  ;;  %p399_p8 = scmp.ne.s32.totalorder %s189_s5, %s398_s24  ;;  %s497_s28 = smov [#allocation5]  }
  0x34   : > { %s402_s10 = sshll.u32 %s497_s28, 4  ;;  %s403_s10 = int_to_ptr.vmem [resolvable:$false] %s402_s10 }
  0x35   : > { %v155_v4 = vrot.slane %v154_v3, 2  ;;  %p400_p12 = pnand %p399_p8, %p573_p9  ;;  %s404_s9 = scalar_lea.vmem %s403_s10, 128 }
  0x36   : > { %p405_p1 = scmp.lt.s32.totalorder %s189_s5, %s403_s10  ;;  %p406_p2 = scmp.lt.s32.totalorder %s404_s9, %s398_s24 }
  0x37   : > { %v156_v5 = vmax.f32 %v154_v3, %v155_v4  ;;  %p401_p0 = pneg %p400_p12 }
  0x38   : > { %p407_p4 = por %p406_p2, %p405_p1 }
  0x39   : > { %v157_v6 = vrot.slane %v156_v5, 1 }
  0x3a   : > { %p408_p5 = pnand %p407_p4, %p401_p0 }
  0x3b   : > { %v158_v7 = vmax.f32 %v156_v5, %v157_v6 }
  0x3d   : > { %v159_v8 = vsub.f32 %v150_v0, %v158_v7 }
  0x3f   : > { %v160_v9 = vmul.f32 1.442695, %v159_v8 }
  0x41   : > { %366 = vpow2.f32 %v160_v9 }
  0x4e   : > { %v367_v10 = vpop.eup %366 }
  0x4f   : > { %v162_v11 = vsel %vm151_vm0, %v367_v10, 0.0 }
  0x50   : > { %v163_v12 = vrot.slane %v162_v11, 4 }
  0x52   : > { %v164_v13 = vadd.f32 %v163_v12, %v162_v11 }
  0x54   : > { %v165_v14 = vrot.slane %v164_v13, 2 }
  0x56   : > { %v166_v15 = vadd.f32 %v165_v14, %v164_v13 }
  0x58   : > { %v167_v16 = vrot.slane %v166_v15, 1 }
  0x5a   : > { %v168_v17 = vadd.f32 %v167_v16, %v166_v15 }
  0x5c   : > { %368 = vrcp.f32 %v168_v17 }
  0x69   : > { %v369_v18 = vpop.eup %368 }
  0x6a   : > { %v170_v19 = vmul.f32 %v369_v18, %v367_v10 }
  0x6c   : > { %171 = vst [vmem:[%s149_s4] sm:$0xf] %v170_v19 }
  0x6d   : > { %411 = shalt.err (!%p408_p5)
}
  0x6e   : > { %s412_s29 = scalar_lea.hbm %s186_s18, 64  ;;  %s416_s30 = scalar_lea.hbm %s665_s1, 256 }
  0x6f   : > { %p413_p6 = scmp.ne.s32.totalorder %s186_s18, %s412_s29  ;;  %p417_p11 = scmp.lt.s32.totalorder %s186_s18, %s665_s1 }
  0x70   : > { %p418_p3 = scmp.lt.s32.totalorder %s416_s30, %s412_s29 }
  0x71   : > { %p414_p7 = pnand %p413_p6, %p573_p9 }
  0x72   : > { %p419_p13 = por %p418_p3, %p417_p11 }
  0x73   : > { %p415_p10 = pneg %p414_p7 }
  0x75   : > { %p420_p8 = pnand %p419_p13, %p415_p10 }
  0x77   : > { %423 = shalt.err (!%p420_p8)
}
  0x78   : > { %290 = dma.vmem_to_hbm [thread:$0]  (%p573_p9), %s189_s5, 64, %s186_s18, %s173_s23  }
  0x79 PF: > { %p301_p12 = scmp.ge.s32.totalorder %s494_s13, 2  ;;  %s200_s3 = sand.u32 1, %s466_s6  }
  0x7a   : > { %p671_p0 = scmp.ne.s32.totalorder %s669_s25, 0  ;;  %s201_s4 = scalar_lea.sflag [#allocation4], %s200_s3 }
  0x7c   : > { %p297_p1 = pnand %p301_p12, %p671_p0 }
  0x7e   : > { %p298_p2 = pneg %p297_p1 }
  0x80   : > { %461 = dma.done.wait (%p298_p2), %s201_s4, 64  }
  0x81   : > { %463 = vsyncadd (%p298_p2), %s201_s4, 4294967232  ;;  %s17_s13 = sadd.s32 1, %s494_s13   ;;  %s672_s6 = smov %s470_s7 }
  0x82   : > { %p14_p4 = scmp.ge.s32.totalorder %s17_s13, 6   ;;  %s673_s7 = smov %s474_s8 }
  0x83   : > { %s674_s8 = smov %s586_s27  ;;  %s675_s9 = smov %s486_s11 }
  0x84   : > { %s676_s10 = smov %s490_s12  ;;  %s677_s11 = smov %s680_s16 }
  0x85   : > { %s678_s12 = smov %s684_s17  ;;  %16 = sbr.rel (!%p14_p4) target bundleno = 7 (0x7), region = 69 }
  0x8a   :  { %206 = vsyncpa [#allocation3], 1 }
  0x8b   :  { %208 = vsyncpa [#allocation3 + $0x1], 1 }
  0x8c   :  { %209 = vsyncpa [#allocation4], 1 }
  0x8d   :  { %211 = vsyncpa [#allocation4 + $0x1], 1 }

</bundles_post_ra>
